<compile_context>
chip_gen: v5e
topology: v5e:2x2
jax: 0.10.0
libtpu: 0.0.40
codegen_flags: <defaults>
</compile_context>

<pallas_src>
import functools

import jax
import jax.numpy as jnp
from jax.experimental import pallas as pl
from jax.experimental.pallas import tpu as pltpu

EPS = 1e-5
VMEM_LIMIT = 32 * 1024 * 1024  # conservative scoped-VMEM budget, valid on v5e/v6e/v7x


def _pick_tile(m, target=256):
    for t in (target, target // 2, 128, 64, 32, 16, 8, 4, 2, 1):
        if 0 < t <= m and m % t == 0:
            return t
    return m


# ---------------------------------------------------------------------------
# Pallas kernels
# ---------------------------------------------------------------------------
def _mm_stats_kernel(*refs, in_act):
    """y = [relu(x*s+t)] @ w  for one M-tile; also emits per-tile (sum, sumsq).

    refs (in_act=True):  x(tm,K) w(K,C) s(1,K) t(1,K) | y(tm,C) st(2,C)
    refs (in_act=False): x(tm,K) w(K,C)               | y(tm,C) st(2,C)
    """
    if in_act:
        x_ref, w_ref, s_ref, t_ref, y_ref, st_ref = refs
    else:
        x_ref, w_ref, y_ref, st_ref = refs

    x = x_ref[...]
    if in_act:
        x = jnp.maximum(x.astype(jnp.float32) * s_ref[...] + t_ref[...], 0.0)
    y = jnp.dot(x.astype(jnp.bfloat16), w_ref[...],
                preferred_element_type=jnp.float32)
    y_ref[...] = y
    st_ref[...] = jnp.concatenate(
        [jnp.sum(y, axis=0, keepdims=True),
         jnp.sum(y * y, axis=0, keepdims=True)], axis=0)


def _conv3x3_kernel(y1_ref, s1_ref, t1_ref, w2_ref, y2_ref, st_ref, *, stride):
    """3x3 conv (pad=1) for one image, with bn1+relu+zero-pad fused as prologue.

    y1:(H,W,P) raw conv1 out; w2:(9,P,Pout) bf16; y2:(OH*OW,Pout); st:(2,Pout).
    The 3x3 conv is computed as 9 shifted-window matmuls accumulated in f32.
    """
    H, W, P = y1_ref.shape
    _, Pout = y2_ref.shape
    OH = (H + 2 - 3) // stride + 1
    OW = (W + 2 - 3) // stride + 1

    a = jnp.maximum(y1_ref[...] * s1_ref[...] + t1_ref[...], 0.0)   # bn1 + relu (f32)
    zc = jnp.zeros((H, 1, P), jnp.float32)
    xp = jnp.concatenate([zc, a, zc], axis=1)
    zr = jnp.zeros((1, W + 2, P), jnp.float32)
    xp = jnp.concatenate([zr, xp, zr], axis=0)                      # (H+2, W+2, P)

    acc = jnp.zeros((OH * OW, Pout), jnp.float32)
    for kh in range(3):
        for kw in range(3):
            if stride == 1:
                win = xp[kh:kh + OH, kw:kw + OW, :]
            else:
                win = xp[kh:kh + stride * OH:stride, kw:kw + stride * OW:stride, :]
            acc = acc + jnp.dot(win.reshape(OH * OW, P).astype(jnp.bfloat16),
                                w2_ref[kh * 3 + kw],
                                preferred_element_type=jnp.float32)

    y2_ref[...] = acc
    st_ref[...] = jnp.concatenate(
        [jnp.sum(acc, axis=0, keepdims=True),
         jnp.sum(acc * acc, axis=0, keepdims=True)], axis=0)


def _downblock_kernel(y3_ref, s3_ref, t3_ref, wd_ref, d_ref, st_ref, *, stride):
    """Depthwise conv (kernel=K, stride=2, pad=1) for one image with bn3 fused
    as prologue. Vectorized over (H, W, C); only DOH*DOW window reductions.

    y3:(OH,OW,E) raw conv3 out; wd:(K,K,E); d:(DOH*DOW,E) raw dwconv; st:(2,E).
    """
    OH, OW, E = y3_ref.shape
    K = wd_ref.shape[0]
    DOH = (OH + 2 - K) // stride + 1
    DOW = (OW + 2 - K) // stride + 1

    a = y3_ref[...] * s3_ref[...] + t3_ref[...]                     # bn3 applied (f32)
    zc = jnp.zeros((OH, 1, E), jnp.float32)
    xp = jnp.concatenate([zc, a, zc], axis=1)
    zr = jnp.zeros((1, OW + 2, E), jnp.float32)
    xp = jnp.concatenate([zr, xp, zr], axis=0)                      # (OH+2, OW+2, E)

    w = wd_ref[...]
    rows = []
    for oh in range(DOH):
        for ow in range(DOW):
            win = xp[oh * stride:oh * stride + K, ow * stride:ow * stride + K, :]
            rows.append(jnp.sum(win * w, axis=(0, 1), keepdims=True).reshape(1, E))
    y = jnp.concatenate(rows, axis=0)                               # (DOH*DOW, E)

    d_ref[...] = y
    st_ref[...] = jnp.concatenate(
        [jnp.sum(y, axis=0, keepdims=True),
         jnp.sum(y * y, axis=0, keepdims=True)], axis=0)


def _fuse_kernel(y3_ref, sc_ref, dm_ref, s3_ref, t3_ref, ssc_ref, tsc_ref,
                 sd_ref, td_ref, o_ref):
    """out = relu( bn_s(sc) + bn3(y3) * sigmoid(bn_d(dmap_up)) ) for one M-tile."""
    out3 = y3_ref[...] * s3_ref[...] + t3_ref[...]
    m = dm_ref[...] * sd_ref[...] + td_ref[...]
    gate = pl.reciprocal(1.0 + jnp.exp(-m), approx=True)            # sigmoid via EUP
    sc = sc_ref[...].astype(jnp.float32) * ssc_ref[...] + tsc_ref[...]
    o_ref[...] = jnp.maximum(sc + out3 * gate, 0.0)


# ---------------------------------------------------------------------------
# Wrappers
# ---------------------------------------------------------------------------
def _bn_affine(stats, count, gamma, beta):
    """Reduce per-tile (sum, sumsq) to exact batch-norm affine (scale, shift)."""
    c = stats.shape[-1]
    st = stats.reshape(-1, 2, c)
    s = jnp.sum(st[:, 0, :], axis=0)
    ss = jnp.sum(st[:, 1, :], axis=0)
    mean = s / count
    var = jnp.maximum(ss / count - mean * mean, 0.0)                # biased variance
    scale = gamma * jax.lax.rsqrt(var + EPS)
    shift = beta - mean * scale
    return scale.reshape(1, c).astype(jnp.float32), shift.reshape(1, c).astype(jnp.float32)


def _mosaic_params(n_par_axes):
    return pltpu.CompilerParams(
        dimension_semantics=("parallel",) * n_par_axes,
        vmem_limit_bytes=VMEM_LIMIT)


def matmul_stats(x2d, w_bf16, s_in=None, t_in=None, tm_target=256):
    """Tiled y = [relu(x*s+t)] @ w over the M axis, plus per-tile BN statistics."""
    M, K = x2d.shape
    C = w_bf16.shape[1]
    tm = _pick_tile(M, tm_target)
    G = M // tm
    in_act = s_in is not None

    row = lambda i: (i, 0)
    par = lambda i: (0, 0)
    in_specs = [pl.BlockSpec((tm, K), row), pl.BlockSpec((K, C), par)]
    args = [x2d, w_bf16]
    if in_act:
        in_specs += [pl.BlockSpec((1, K), par), pl.BlockSpec((1, K), par)]
        args += [s_in, t_in]

    y, st = pl.pallas_call(
        functools.partial(_mm_stats_kernel, in_act=in_act),
        grid=(G,),
        out_shape=(jax.ShapeDtypeStruct((M, C), jnp.float32),
                   jax.ShapeDtypeStruct((G, 2, C), jnp.float32)),
        in_specs=in_specs,
        out_specs=(pl.BlockSpec((tm, C), row),
                   pl.BlockSpec((None, 2, C), lambda i: (i, 0, 0))),
        compiler_params=_mosaic_params(1),
    )(*args)
    return y, st


def conv3x3_fused(y1_4d, s1, t1, w2_taps, stride):
    """Per-image 3x3 conv (fused bn1+relu+pad prologue) with partial BN2 stats."""
    N, H, W, P = y1_4d.shape
    Pout = w2_taps.shape[-1]
    OH = (H + 2 - 3) // stride + 1
    OW = (W + 2 - 3) // stride + 1

    par2 = lambda n: (0, 0)
    y2, st = pl.pallas_call(
        functools.partial(_conv3x3_kernel, stride=stride),
        grid=(N,),
        out_shape=(jax.ShapeDtypeStruct((N, OH * OW, Pout), jnp.float32),
                   jax.ShapeDtypeStruct((N, 2, Pout), jnp.float32)),
        in_specs=[pl.BlockSpec((None, H, W, P), lambda n: (n, 0, 0, 0)),
                  pl.BlockSpec((1, P), par2),
                  pl.BlockSpec((1, P), par2),
                  pl.BlockSpec((9, P, Pout), lambda n: (0, 0, 0))],
        out_specs=(pl.BlockSpec((None, OH * OW, Pout), lambda n: (n, 0, 0)),
                   pl.BlockSpec((None, 2, Pout), lambda n: (n, 0, 0))),
        compiler_params=_mosaic_params(1),
    )(y1_4d, s1, t1, w2_taps)
    return y2, st, OH, OW


def downblock(y3_4d, s3, t3, wd, stride=2, pad=1):
    """Per-image depthwise conv (fused bn3 prologue) with partial BN_d stats."""
    N, OH, OW, E = y3_4d.shape
    K = wd.shape[0]
    DOH = (OH + 2 * pad - K) // stride + 1
    DOW = (OW + 2 * pad - K) // stride + 1

    par2 = lambda n: (0, 0)
    d, st = pl.pallas_call(
        functools.partial(_downblock_kernel, stride=stride),
        grid=(N,),
        out_shape=(jax.ShapeDtypeStruct((N, DOH * DOW, E), jnp.float32),
                   jax.ShapeDtypeStruct((N, 2, E), jnp.float32)),
        in_specs=[pl.BlockSpec((None, OH, OW, E), lambda n: (n, 0, 0, 0)),
                  pl.BlockSpec((1, E), par2),
                  pl.BlockSpec((1, E), par2),
                  pl.BlockSpec((K, K, E), lambda n: (0, 0, 0))],
        out_specs=(pl.BlockSpec((None, DOH * DOW, E), lambda n: (n, 0, 0)),
                   pl.BlockSpec((None, 2, E), lambda n: (n, 0, 0))),
        compiler_params=_mosaic_params(1),
    )(y3_4d, s3, t3, wd)
    return d.reshape(N, DOH, DOW, E), st, DOH, DOW


def fuse(y3, ysc, dm_up, s3, t3, ssc, tsc, sd, td, tm_target=256):
    M, E = y3.shape
    tm = _pick_tile(M, tm_target)
    G = M // tm
    row = lambda i: (i, 0)
    par = lambda i: (0, 0)
    return pl.pallas_call(
        _fuse_kernel,
        grid=(G,),
        out_shape=jax.ShapeDtypeStruct((M, E), jnp.float32),
        in_specs=[pl.BlockSpec((tm, E), row), pl.BlockSpec((tm, E), row),
                  pl.BlockSpec((tm, E), row)] + [pl.BlockSpec((1, E), par)] * 6,
        out_specs=pl.BlockSpec((tm, E), row),
        compiler_params=_mosaic_params(1),
    )(y3, ysc, dm_up, s3, t3, ssc, tsc, sd, td)


def _nearest_resize(m, out_h, out_w):
    """PyTorch F.interpolate(mode='nearest'): src = floor(dst * in / out)."""
    _, h, w, _ = m.shape
    ih = (jnp.arange(out_h) * h) // out_h
    iw = (jnp.arange(out_w) * w) // out_w
    return m[:, ih][:, :, iw]


def bottleneck_forward(x_nchw, params, stride):
    x = jnp.transpose(x_nchw, (0, 2, 3, 1)).astype(jnp.float32)      # NHWC
    N, H, W, Cin = x.shape
    P = params["w1"].shape[1]
    E = params["w3"].shape[1]
    x_bf = x.astype(jnp.bfloat16)

    # conv1 (1x1) -> raw y1 + bn1 affine
    M1 = N * H * W
    y1, st1 = matmul_stats(x_bf.reshape(M1, Cin), params["w1"])
    s1, t1 = _bn_affine(st1, M1, params["g1"], params["b1"])

    # conv2 (3x3, stride, pad=1) with fused bn1+relu+pad -> raw y2 + bn2 affine
    y2, st2, OH, OW = conv3x3_fused(y1.reshape(N, H, W, P), s1, t1,
                                    params["w2"], stride)
    M2 = N * OH * OW
    s2, t2 = _bn_affine(st2, M2, params["g2"], params["b2"])

    # conv3 (1x1) with fused bn2+relu prologue -> raw y3 + bn3 affine
    y3, st3 = matmul_stats(y2.reshape(M2, P), params["w3"], s_in=s2, t_in=t2)
    s3, t3 = _bn_affine(st3, M2, params["g3"], params["b3"])

    # Downblock: depthwise conv (kernel=spatial, stride=2, pad=1) on bn3(y3)
    draw, std, DOH, DOW = downblock(y3.reshape(N, OH, OW, E), s3, t3, params["wd"])
    sd, td = _bn_affine(std, N * DOH * DOW, params["gd"], params["bd"])
    # self.mlp is the identity (mlp=False in the module)

    # F.interpolate(map, out.shape[-1]) : nearest upsample (bn_d folded into fuse)
    assert OH == OW, "GENet Bottleneck assumes square feature maps"
    dm_up = _nearest_resize(draw, OH, OW).reshape(M2, E)

    # shortcut
    if stride != 1 or Cin != E:
        xs = x_bf[:, ::stride, ::stride, :].reshape(M2, Cin)
        ysc, stsc = matmul_stats(xs, params["ws"])
        ssc, tsc = _bn_affine(stsc, M2, params["gs"], params["bs"])
    else:
        ysc = x.reshape(M2, E)
        ssc = jnp.ones((1, E), jnp.float32)
        tsc = jnp.zeros((1, E), jnp.float32)

    # out = relu( bn_s(shortcut) + bn3(y3) * sigmoid(bn_d(map)) )  (single fused pass)
    out = fuse(y3, ysc, dm_up, s3, t3, ssc, tsc, sd, td)

    out = out.reshape(N, OH, OW, E)
    return jnp.transpose(out, (0, 3, 1, 2))                          # back to NCHW


# ---------------------------------------------------------------------------
# Deterministic parameter construction (PyTorch-layout init, converted for TPU)
# ---------------------------------------------------------------------------
def make_params(key, in_planes, planes, spatial):
    E = 4 * planes
    ks = jax.random.split(key, 16)

    def nrm(k, shape, scale=0.1):
        return (scale * jax.random.normal(k, shape)).astype(jnp.float32)

    # PyTorch layouts: conv weight (Cout, Cin, kh, kw); depthwise (C, 1, K, K)
    w1_t = nrm(ks[0], (planes, in_planes, 1, 1))
    w2_t = nrm(ks[1], (planes, planes, 3, 3))
    w3_t = nrm(ks[2], (E, planes, 1, 1))
    ws_t = nrm(ks[3], (E, in_planes, 1, 1))
    wd_t = nrm(ks[4], (E, 1, spatial, spatial))

    def bn(kg, kb, c):
        return (1.0 + nrm(kg, (c,))), nrm(kb, (c,))

    g1, b1 = bn(ks[5], ks[6], planes)
    g2, b2 = bn(ks[7], ks[8], planes)
    g3, b3 = bn(ks[9], ks[10], E)
    gs, bs = bn(ks[11], ks[12], E)
    gd, bd = bn(ks[13], ks[14], E)

    return {
        # MXU operands stored as bf16 (f32 accumulation in-kernel)
        "w1": w1_t[:, :, 0, 0].T.astype(jnp.bfloat16),                       # (Cin, P)
        "w2": jnp.transpose(w2_t, (2, 3, 1, 0)).reshape(9, planes, planes)
                 .astype(jnp.bfloat16),                                      # (9, P, P)
        "w3": w3_t[:, :, 0, 0].T.astype(jnp.bfloat16),                       # (P, E)
        "ws": ws_t[:, :, 0, 0].T.astype(jnp.bfloat16),                       # (Cin, E)
        # depthwise weight used on the VPU -> keep f32
        "wd": jnp.transpose(wd_t[:, 0, :, :], (1, 2, 0)),                    # (K, K, E)
        "g1": g1, "b1": b1, "g2": g2, "b2": b2, "g3": g3, "b3": b3,
        "gs": gs, "bs": bs, "gd": gd, "bd": bd,
    }


if __name__ == "__main__":
    key = jax.random.PRNGKey(0)
    kx, kp = jax.random.split(key)

    # Bottleneck(in_planes=16, planes=8, stride=1, spatial=16); expansion*planes = 32
    N, in_planes, planes, stride, spatial = 2, 16, 8, 1, 16
    H = W = 16  # feature map size == `spatial`, as in GENet

    x = jax.random.normal(kx, (N, in_planes, H, W), dtype=jnp.float32)  # NCHW like PyTorch
    params = make_params(kp, in_planes, planes, spatial)

    out = bottleneck_forward(x, params, stride)
    out = jax.block_until_ready(out)

    expected_shape = (N, 4 * planes, H // stride, W // stride)
    assert out.shape == expected_shape, (out.shape, expected_shape)
    assert bool(jnp.all(jnp.isfinite(out)))
    assert bool(jnp.all(out >= 0.0))  # final ReLU
    print("KERNEL_OK")
</pallas_src>

<mosaic_0001>
module attributes {stable_mosaic.version = 11 : i64} {
  func.func @_mm_stats_kernel(%arg0: i32, %arg1: memref<256x16xbf16, #tpu.memory_space<vmem>>, %arg2: memref<16x8xbf16, #tpu.memory_space<vmem>>, %arg3: memref<256x8xf32, #tpu.memory_space<vmem>>, %arg4: memref<1x2x8xf32, #tpu.memory_space<vmem>>) attributes {dimension_semantics = [#tpu.dimension_semantics<parallel>], iteration_bounds = array<i64: 2>, scalar_prefetch = 0 : i64, scratch_operands = 0 : i64, tpu.core_type = #tpu.core_type<tc>, window_params = [{transform_indices = @transform_0, window_bounds = array<i64: 256, 16>}, {pipeline_mode = #tpu.pipeline_mode<synchronous>, transform_indices = @transform_1, window_bounds = array<i64: 16, 8>}, {transform_indices = @transform_2, window_bounds = array<i64: 256, 8>}, {transform_indices = @transform_3, window_bounds = array<i64: 1, 2, 8>}]} {
    %c0 = arith.constant 0 : index
    %c0_0 = arith.constant 0 : index
    %0 = vector.load %arg1[%c0, %c0_0] : memref<256x16xbf16, #tpu.memory_space<vmem>>, vector<256x16xbf16>
    %c0_1 = arith.constant 0 : index
    %c0_2 = arith.constant 0 : index
    %1 = vector.load %arg2[%c0_1, %c0_2] : memref<16x8xbf16, #tpu.memory_space<vmem>>, vector<16x8xbf16>
    %cst = arith.constant dense<0.000000e+00> : vector<256x8xf32>
    %2 = tpu.matmul %0, %1, %cst {dimension_numbers = #tpu.dot_dimension_numbers<[1], [0], [0], [1], [0, 0, 1, 1], [], []>} : vector<256x16xbf16>, vector<16x8xbf16>, vector<256x8xf32> -> vector<256x8xf32>
    %c0_3 = arith.constant 0 : index
    %c0_4 = arith.constant 0 : index
    %3 = vector.load %arg3[%c0_3, %c0_4] : memref<256x8xf32, #tpu.memory_space<vmem>>, vector<256x8xf32>
    tpu.vector_store %arg3[%c0_3, %c0_4], %2 {strides = array<i32>} : memref<256x8xf32, #tpu.memory_space<vmem>>, vector<256x8xf32>,
    %cst_5 = arith.constant dense<0.000000e+00> : vector<8xf32>
    %4 = vector.multi_reduction <add>, %2, %cst_5 [0] : vector<256x8xf32> to vector<8xf32>
    %5 = vector.shape_cast %4 : vector<8xf32> to vector<1x8xf32>
    %6 = arith.mulf %2, %2 : vector<256x8xf32>
    %cst_6 = arith.constant dense<0.000000e+00> : vector<8xf32>
    %7 = vector.multi_reduction <add>, %6, %cst_6 [0] : vector<256x8xf32> to vector<8xf32>
    %8 = vector.shape_cast %7 : vector<8xf32> to vector<1x8xf32>
    %9 = tpu.concatenate %5, %8 in 0 : vector<1x8xf32>, vector<1x8xf32> -> vector<2x8xf32>
    %c0_7 = arith.constant 0 : index
    %c0_8 = arith.constant 0 : index
    %c0_9 = arith.constant 0 : index
    %10 = vector.load %arg4[%c0_7, %c0_8, %c0_9] : memref<1x2x8xf32, #tpu.memory_space<vmem>>, vector<1x2x8xf32>
    %11 = vector.shape_cast %10 : vector<1x2x8xf32> to vector<2x8xf32>
    %12 = vector.shape_cast %9 : vector<2x8xf32> to vector<1x2x8xf32>
    tpu.vector_store %arg4[%c0_7, %c0_8, %c0_9], %12 {strides = array<i32>} : memref<1x2x8xf32, #tpu.memory_space<vmem>>, vector<1x2x8xf32>,
    return
  }
  func.func @transform_0(%arg0: i32) -> (i32, i32) {
    %c0_i32 = arith.constant 0 : i32
    %c0_i32_0 = arith.constant 0 : i32
    return %arg0, %c0_i32 : i32, i32
  }
  func.func @transform_1(%arg0: i32) -> (i32, i32) {
    %c0_i32 = arith.constant 0 : i32
    %c0_i32_0 = arith.constant 0 : i32
    %c0_i32_1 = arith.constant 0 : i32
    return %c0_i32, %c0_i32_0 : i32, i32
  }
  func.func @transform_2(%arg0: i32) -> (i32, i32) {
    %c0_i32 = arith.constant 0 : i32
    %c0_i32_0 = arith.constant 0 : i32
    return %arg0, %c0_i32 : i32, i32
  }
  func.func @transform_3(%arg0: i32) -> (i32, i32, i32) {
    %c0_i32 = arith.constant 0 : i32
    %c0_i32_0 = arith.constant 0 : i32
    %c0_i32_1 = arith.constant 0 : i32
    return %arg0, %c0_i32, %c0_i32_0 : i32, i32, i32
  }
}

</mosaic_0001>

<bundles_post_ra>
// kernel: tpu_custom_call.1
= control target key start
LH: loop header
LB: loop body
LE: loop exit
PB: predicated region body
PF: predicated region fallthrough
CT: control target
= control target key end

     0   :  { %9 = vsyncpa [#allocation3], 0  ;;  %s1378_s0 = inlined_call_operand.vmem [shape: bf16[512,16], index: 0, kind: input, shape index: {}]   ;;  %s1379_s1 = inlined_call_operand.vmem [shape: bf16[16,8], index: 1, kind: input, shape index: {}]   ;;  %s1380_s2 = inlined_call_operand.vmem [shape: f32[512,8], index: 2, kind: output, shape index: {0}]   ;;  %s1381_s3 = inlined_call_operand.hbm [shape: f32[2,2,8], index: 3, kind: output, shape index: {1}]  }
   0x1   :  { %11 = vsyncpa [#allocation3 + $0x1], 0  ;;  %s1000_s12 = smov 0   ;;  %s1002_s13 = smov 0  }
   0x2   :  { %s1004_s14 = smov 0   ;;  %s1006_s15 = smov 0  }
   0x3 LB: > { %s1021_s16 = sadd.s32 4294967295, %s978_s15   ;;  %s760_s17 = sadd.s32 4294967294, %s978_s15   ;;  %s978_s15 = sphi %s1006_s15, %s1387_s15   ;;  %s974_s14 = sphi %s1004_s14, %s1386_s14   ;;  %s970_s13 = sphi %s1002_s13, %s1385_s13   ;;  %s966_s12 = sphi %s1000_s12, %s1384_s12  }
   0x4   : > { %s1025_s18 = sadd.s32 1, %s978_s15   ;;  %s97_s19 = sadd.s32 1, %s974_s14 }
   0x5   : > { %s94_s20 = ssub.s32 %s978_s15, %s1025_s18  ;;  %p107_p0 = scmp.ne.s32.totalorder %s974_s14, %s970_s13 }
   0x6   : > { %p95_p1 = scmp.eq.s32.totalorder %s94_s20, 0  ;;  %p108_p2 = scmp.eq.s32.totalorder %s1021_s16, 1 }
   0x7   : > { %p113_p3 = scmp.ne.s32.totalorder %s970_s13, %s966_s12  ;;  %p114_p4 = scmp.eq.s32.totalorder %s760_s17, 1 }
   0x8   : > { %s1036_s21 = scalar_select %p95_p1, %s974_s14, %s97_s19  }
   0x9   : > { %p1038_p5 = por %p108_p2, %p107_p0  ;;  %p1042_p6 = por %p114_p4, %p113_p3 }
   0xa   : > { %p763_p7 = scmp.ge.s32.totalorder %s978_s15, 1  ;;  %p144_p8 = scmp.lt.s32.totalorder %s978_s15, 3 }
   0xc   : > { %p145_p9 = pnand %p763_p7, %p144_p8 }
   0xd   : > { %s765_s26 = sshll.u32 (!%p145_p9), %s1021_s16, 5  ;;  %s170_s8 = sand.u32 (!%p145_p9), 1, %s970_s13  }
   0xe   : > { %148 = sbr.rel (%p145_p9) target bundleno = 274 (0x112), region = 28  ;;  %p174_p10 = scmp.lt.s32.totalorder (!%p145_p9), %s765_s26, 63 }
   0xf   : > { %s764_s9 = sshll.u32 (!%p145_p9), %s170_s8, 1  ;;  %s854_s10 = sshll.u32 (!%p145_p9), %s1021_s16, 1 }
  0x10   : > { %s671_s19 = scalar_lea.hbm (!%p145_p9), %s1381_s3, %s854_s10  ;;  %s172_s20 = scalar_lea.vmem (!%p145_p9), [#allocation2], %s764_s9 }
  0x11   : > { %s673_s24 = sshll.u32 (!%p145_p9), %s172_s20, 4  ;;  %s675_s25 = sshll.u32 (!%p145_p9), %s671_s19, 4  ;;  %s674_s24 = int_to_ptr.vmem [resolvable:$true] %s673_s24  ;;  %s676_s25 = int_to_ptr.hbm [resolvable:$true] %s675_s25 }
  0x12   : > { %s657_s16 = scalar_lea.sflag (!%p145_p9), [#allocation3], %s170_s8 }
  0x13   : > { %v873_v0 = vld [vmem:[%s1379_s1] sm:$0xff]  ;;  %s1389_s26 = smov (!%p174_p10, %s765_s26), 63  ;;  %vm306_vm0 = vcmask 130048   ;;  %vm444_vm1 = vcmask 64512   ;;  %vm647_vm2 = vcmask 1040384   ;;  %vm649_vm3 = vcmask 58368  }
  0x14   : > { %362 = vmatpush.bf16.msra.mxu0 %v873_v0  ;;  %874 = vmatpush.bf16.msra.mxu1 %v873_v0  ;;  %s766_s27 = sshll.u32 %s1389_s26, 2  ;;  %s768_s4 = sshll.u32 %s1389_s26, 3 }
  0x15   : > { %875 = vmatpush.bf16.msra.mxu2 %v873_v0  ;;  %876 = vmatpush.bf16.msra.mxu3 %v873_v0  ;;  %s177_s30 = scalar_lea.vmem %s1378_s0, %s766_s27  ;;  %s1078_s7 = scalar_lea.vmem %s1380_s2, %s768_s4 }
  0x16   : > { %v857_v1 = vld [vmem:[%s177_s30] sm:$0xff]  ;;  %v858_v5 = vld [vmem:[%s177_s30 + $0x8] sm:$0xff]  ;;  %v859_v9 = vld [vmem:[%s177_s30 + $0x10] sm:$0xff]  ;;  %s930_s26 = sshra.s32 %s676_s25, 4  ;;  %s931_s26 = int_to_ptr.hbm [resolvable:$true] %s930_s26 }
  0x17   : > { %v861_v2 = vld [vmem:[%s177_s30 + $0x20] sm:$0xff]  ;;  %837 = vmatmul.msk.bf16.vlgmr.msra.gmra.mxu0 %vm306_vm0, %v857_v1  ;;  %v862_v6 = vld [vmem:[%s177_s30 + $0x28] sm:$0xff]  ;;  %v863_v10 = vld [vmem:[%s177_s30 + $0x30] sm:$0xff]  ;;  %s932_s27 = scalar_lea.hbm %s931_s26, 2  ;;  %p937_p0 = scmp.lt.s32.totalorder %s931_s26, %s1381_s3 }
  0x18   : > { %v865_v3 = vld [vmem:[%s177_s30 + $0x40] sm:$0xff]  ;;  %841 = vmatmul.msk.bf16.vlgmr.msra.gmra.mxu1 %vm306_vm0, %v861_v2  ;;  %v866_v7 = vld [vmem:[%s177_s30 + $0x48] sm:$0xff]  ;;  %v867_v11 = vld [vmem:[%s177_s30 + $0x50] sm:$0xff]  ;;  %p933_p11 = scmp.ne.s32.totalorder %s931_s26, %s932_s27 }
  0x19   : > { %v869_v4 = vld [vmem:[%s177_s30 + $0x60] sm:$0xff]  ;;  %845 = vmatmul.msk.bf16.vlgmr.msra.gmra.mxu2 %vm306_vm0, %v865_v3  ;;  %v870_v8 = vld [vmem:[%s177_s30 + $0x68] sm:$0xff]  ;;  %v871_v12 = vld [vmem:[%s177_s30 + $0x70] sm:$0xff] }
  0x1a   : > { %849 = vmatmul.msk.bf16.vlgmr.msra.gmra.mxu3 %vm306_vm0, %v869_v4  ;;  %v860_v13 = vld [vmem:[%s177_s30 + $0x18] sm:$0xff]  ;;  %p934_p12 = pnand %p933_p11, %p1038_p5 }
  0x1b   : > { %v864_v14 = vld [vmem:[%s177_s30 + $0x38] sm:$0xff] }
  0x1c   : > { %v868_v15 = vld [vmem:[%s177_s30 + $0x58] sm:$0xff]  ;;  %p935_p13 = pneg %p934_p12 }
  0x1d   : > { %v872_v16 = vld [vmem:[%s177_s30 + $0x78] sm:$0xff]  ;;  %s936_s30 = scalar_lea.hbm %s1381_s3, 4 }
  0x1e   : > { %p938_p1 = scmp.lt.s32.totalorder %s936_s30, %s932_s27 }
  0x20   : > { %p939_p2 = por %p938_p1, %p937_p0 }
  0x22   : > { %p940_p3 = pnand %p939_p2, %p935_p13 }
  0x27   : > { %838 = vmatmul.msk.bf16.gmra.mxu0 %vm306_vm0, %v858_v5 }
  0x28   : > { %842 = vmatmul.msk.bf16.gmra.mxu1 %vm306_vm0, %v862_v6 }
  0x29   : > { %846 = vmatmul.msk.bf16.gmra.mxu2 %vm306_vm0, %v866_v7 }
  0x2a   : > { %850 = vmatmul.msk.bf16.gmra.mxu3 %vm306_vm0, %v870_v8 }
  0x37   : > { %839 = vmatmul.msk.bf16.gmra.mxu0 %vm306_vm0, %v859_v9 }
  0x38   : > { %843 = vmatmul.msk.bf16.gmra.mxu1 %vm306_vm0, %v863_v10 }
  0x39   : > { %847 = vmatmul.msk.bf16.gmra.mxu2 %vm306_vm0, %v867_v11 }
  0x3a   : > { %851 = vmatmul.msk.bf16.gmra.mxu3 %vm306_vm0, %v871_v12 }
  0x47   : > { %840 = vmatmul.msk.bf16.gmra.mxu0 %vm306_vm0, %v860_v13 }
  0x48   : > { %844 = vmatmul.msk.bf16.gmra.mxu1 %vm306_vm0, %v864_v14 }
  0x49   : > { %848 = vmatmul.msk.bf16.gmra.mxu2 %vm306_vm0, %v868_v15 }
  0x4a   : > { %852 = vmatmul.msk.bf16.gmra.mxu3 %vm306_vm0, %v872_v16 }
  0x94   : > { %v364_v17 = vpop.f32.mrf.mxu0 }
  0x95   : > { %v1080_v18 = vpop.f32.mrf.mxu1  ;;  %445 = vst.msk [vmem:[%s1078_s7] sm:$0xff] %vm444_vm1, %v364_v17  ;;  %v546_v40 = vmul.f32 %v364_v17, %v364_v17  ;;  %v477_v43 = vsel %vm444_vm1, %v364_v17, 0.0 }
  0x96   : > { %453 = vst.msk [vmem:[%s1078_s7 + $0x40] sm:$0xff] %vm444_vm1, %v1080_v18  ;;  %v554_v14 = vmul.f32 %v1080_v18, %v1080_v18 }
  0x97   : > { %v578_v48 = vsel %vm444_vm1, %v546_v40, 0.0 }
  0x9c   : > { %v1087_v19 = vpop.f32.mrf.mxu2  ;;  %v366_v20 = vpop.f32.mrf.mxu0 }
  0x9d   : > { %v1089_v21 = vpop.f32.mrf.mxu1  ;;  %461 = vst.msk [vmem:[%s1078_s7 + $0x80] sm:$0xff] %vm444_vm1, %v1087_v19  ;;  %v1096_v22 = vpop.f32.mrf.mxu3  ;;  %v547_v38 = vmul.f32 %v366_v20, %v366_v20  ;;  %v478_v41 = vsel %vm444_vm1, %v366_v20, 0.0 }
  0x9e   : > { %446 = vst.msk [vmem:[%s1078_s7 + $0x8] sm:$0xff] %vm444_vm1, %v366_v20  ;;  %v479_v47 = vadd.f32 %v478_v41, %v477_v43  ;;  %v593_v41 = vsel %vm444_vm1, %v554_v14, 0.0 }
  0x9f   : > { %454 = vst.msk [vmem:[%s1078_s7 + $0x48] sm:$0xff] %vm444_vm1, %v1089_v21  ;;  %v579_v44 = vsel %vm444_vm1, %v547_v38, 0.0 }
  0xa0   : > { %469 = vst.msk [vmem:[%s1078_s7 + $0xc0] sm:$0xff] %vm444_vm1, %v1096_v22  ;;  %v580_v53 = vadd.f32 %v579_v44, %v578_v48 }
  0xa4   : > { %v1104_v23 = vpop.f32.mrf.mxu2  ;;  %v369_v24 = vpop.f32.mrf.mxu0 }
  0xa5   : > { %v1106_v25 = vpop.f32.mrf.mxu1  ;;  %462 = vst.msk [vmem:[%s1078_s7 + $0x88] sm:$0xff] %vm444_vm1, %v1104_v23  ;;  %v1113_v26 = vpop.f32.mrf.mxu3  ;;  %v548_v42 = vmul.f32 %v369_v24, %v369_v24  ;;  %v480_v45 = vsel %vm444_vm1, %v369_v24, 0.0  ;;  %v563_v14 = vmul.f32 %v1104_v23, %v1104_v23 }
  0xa6   : > { %447 = vst.msk [vmem:[%s1078_s7 + $0x10] sm:$0xff] %vm444_vm1, %v369_v24  ;;  %v481_v54 = vadd.f32 %v480_v45, %v479_v47  ;;  %v556_v43 = vmul.f32 %v1106_v25, %v1106_v25 }
  0xa7   : > { %455 = vst.msk [vmem:[%s1078_s7 + $0x50] sm:$0xff] %vm444_vm1, %v1106_v25  ;;  %v581_v49 = vsel %vm444_vm1, %v548_v42, 0.0  ;;  %v494_v42 = vsel %vm444_vm1, %v1089_v21, 0.0 }
  0xa8   : > { %470 = vst.msk [vmem:[%s1078_s7 + $0xc8] sm:$0xff] %vm444_vm1, %v1113_v26  ;;  %v582_v61 = vadd.f32 %v581_v49, %v580_v53 }
  0xac   : > { %v1121_v27 = vpop.f32.mrf.mxu2  ;;  %v371_v28 = vpop.f32.mrf.mxu0 }
  0xad   : > { %v1123_v29 = vpop.f32.mrf.mxu1  ;;  %463 = vst.msk [vmem:[%s1078_s7 + $0x90] sm:$0xff] %vm444_vm1, %v1121_v27  ;;  %v1130_v30 = vpop.f32.mrf.mxu3  ;;  %v549_v46 = vmul.f32 %v371_v28, %v371_v28  ;;  %v482_v50 = vsel %vm444_vm1, %v371_v28, 0.0 }
  0xae   : > { %448 = vst.msk [vmem:[%s1078_s7 + $0x18] sm:$0xff] %vm444_vm1, %v371_v28  ;;  %v483_v62 = vadd.f32 %v482_v50, %v481_v54  ;;  %v492_v28 = vsel %vm444_vm1, %v1080_v18, 0.0  ;;  %v557_v47 = vmul.f32 %v1123_v29, %v1123_v29 }
  0xaf   : > { %456 = vst.msk [vmem:[%s1078_s7 + $0x58] sm:$0xff] %vm444_vm1, %v1123_v29  ;;  %v583_v57 = vsel %vm444_vm1, %v549_v46, 0.0  ;;  %v496_v46 = vsel %vm444_vm1, %v1106_v25, 0.0 }
  0xb0   : > { %471 = vst.msk [vmem:[%s1078_s7 + $0xd0] sm:$0xff] %vm444_vm1, %v1130_v30  ;;  %v584_v2 = vadd.f32 %v583_v57, %v582_v61  ;;  %v599_v57 = vsel %vm444_vm1, %v557_v47, 0.0 }
  0xb4   : > { %v1138_v31 = vpop.f32.mrf.mxu2  ;;  %v374_v32 = vpop.f32.mrf.mxu0 }
  0xb5   : > { %v1140_v33 = vpop.f32.mrf.mxu1  ;;  %464 = vst.msk [vmem:[%s1078_s7 + $0x98] sm:$0xff] %vm444_vm1, %v1138_v31  ;;  %v1147_v34 = vpop.f32.mrf.mxu3  ;;  %v550_v51 = vmul.f32 %v374_v32, %v374_v32  ;;  %v484_v58 = vsel %vm444_vm1, %v374_v32, 0.0 }
  0xb6   : > { %449 = vst.msk [vmem:[%s1078_s7 + $0x20] sm:$0xff] %vm444_vm1, %v374_v32  ;;  %v485_v3 = vadd.f32 %v484_v58, %v483_v62  ;;  %v555_v32 = vmul.f32 %v1089_v21, %v1089_v21  ;;  %v597_v21 = vsel %vm444_vm1, %v556_v43, 0.0  ;;  %v558_v53 = vmul.f32 %v1140_v33, %v1140_v33 }
  0xb7   : > { %457 = vst.msk [vmem:[%s1078_s7 + $0x60] sm:$0xff] %vm444_vm1, %v1140_v33  ;;  %v585_v63 = vsel %vm444_vm1, %v550_v51, 0.0  ;;  %v498_v51 = vsel %vm444_vm1, %v1123_v29, 0.0  ;;  %v500_v58 = vsel %vm444_vm1, %v1140_v33, 0.0 }
  0xb8   : > { %472 = vst.msk [vmem:[%s1078_s7 + $0xd8] sm:$0xff] %vm444_vm1, %v1147_v34  ;;  %v586_v6 = vadd.f32 %v585_v63, %v584_v2  ;;  %v595_v45 = vsel %vm444_vm1, %v555_v32, 0.0  ;;  %v601_v62 = vsel %vm444_vm1, %v558_v53, 0.0 }
  0xbc   : > { %v1155_v35 = vpop.f32.mrf.mxu2  ;;  %v376_v36 = vpop.f32.mrf.mxu0 }
  0xbd   : > { %v1157_v37 = vpop.f32.mrf.mxu1  ;;  %465 = vst.msk [vmem:[%s1078_s7 + $0xa0] sm:$0xff] %vm444_vm1, %v1155_v35  ;;  %v1164_v39 = vpop.f32.mrf.mxu3  ;;  %v551_v59 = vmul.f32 %v376_v36, %v376_v36  ;;  %v486_v0 = vsel %vm444_vm1, %v376_v36, 0.0  ;;  %v566_v43 = vmul.f32 %v1155_v35, %v1155_v35 }
  0xbe   : > { %450 = vst.msk [vmem:[%s1078_s7 + $0x28] sm:$0xff] %vm444_vm1, %v376_v36  ;;  %v487_v7 = vadd.f32 %v486_v0, %v485_v3  ;;  %v502_v63 = vsel %vm444_vm1, %v1157_v37, 0.0 }
  0xbf   : > { %458 = vst.msk [vmem:[%s1078_s7 + $0x68] sm:$0xff] %vm444_vm1, %v1157_v37  ;;  %v587_v4 = vsel %vm444_vm1, %v551_v59, 0.0  ;;  %v559_v59 = vmul.f32 %v1157_v37, %v1157_v37 }
  0xc0   : > { %473 = vst.msk [vmem:[%s1078_s7 + $0xe0] sm:$0xff] %vm444_vm1, %v1164_v39  ;;  %v588_v10 = vadd.f32 %v587_v4, %v586_v6 }
  0xc1   : > { %v603_v3 = vsel %vm444_vm1, %v559_v59, 0.0  ;;  %v570_v59 = vmul.f32 %v1096_v22, %v1096_v22 }
  0xc4   : > { %v1179_v52 = vpop.f32.mrf.mxu2  ;;  %v379_v55 = vpop.f32.mrf.mxu0 }
  0xc5   : > { %v1181_v56 = vpop.f32.mrf.mxu1  ;;  %466 = vst.msk [vmem:[%s1078_s7 + $0xa8] sm:$0xff] %vm444_vm1, %v1179_v52  ;;  %v1190_v60 = vpop.f32.mrf.mxu3  ;;  %v552_v1 = vmul.f32 %v379_v55, %v379_v55  ;;  %v488_v5 = vsel %vm444_vm1, %v379_v55, 0.0 }
  0xc6   : > { %451 = vst.msk [vmem:[%s1078_s7 + $0x30] sm:$0xff] %vm444_vm1, %v379_v55  ;;  %v489_v11 = vadd.f32 %v488_v5, %v487_v7  ;;  %v560_v0 = vmul.f32 %v1181_v56, %v1181_v56  ;;  %v504_v33 = vsel %vm444_vm1, %v1181_v56, 0.0  ;;  %v562_v7 = vmul.f32 %v1087_v19, %v1087_v19 }
  0xc7   : > { %459 = vst.msk [vmem:[%s1078_s7 + $0x70] sm:$0xff] %vm444_vm1, %v1181_v56  ;;  %v589_v8 = vsel %vm444_vm1, %v552_v1, 0.0 }
  0xc8   : > { %474 = vst.msk [vmem:[%s1078_s7 + $0xe8] sm:$0xff] %vm444_vm1, %v1190_v60  ;;  %v590_v20 = vadd.f32 %v589_v8, %v588_v10  ;;  %v605_v8 = vsel %vm444_vm1, %v560_v0, 0.0 }
  0xcc   : > { %v1203_v9 = vpop.f32.mrf.mxu2  ;;  %v381_v12 = vpop.f32.mrf.mxu0 }
  0xcd   : > { %v401_v13 = vpop.f32.mrf.mxu1  ;;  %467 = vst.msk [vmem:[%s1078_s7 + $0xb0] sm:$0xff] %vm444_vm1, %v1203_v9  ;;  %v490_v15 = vsel %vm444_vm1, %v381_v12, 0.0  ;;  %v553_v16 = vmul.f32 %v381_v12, %v381_v12  ;;  %v1213_v17 = vpop.f32.mrf.mxu3 }
  0xce   : > { %452 = vst.msk [vmem:[%s1078_s7 + $0x38] sm:$0xff] %vm444_vm1, %v381_v12  ;;  %v491_v24 = vadd.f32 %v490_v15, %v489_v11  ;;  %v561_v4 = vmul.f32 %v401_v13, %v401_v13  ;;  %v506_v37 = vsel %vm444_vm1, %v401_v13, 0.0  ;;  %v508_v12 = vsel %vm444_vm1, %v1087_v19, 0.0 }
  0xcf   : > { %460 = vst.msk [vmem:[%s1078_s7 + $0x78] sm:$0xff] %vm444_vm1, %v401_v13  ;;  %v591_v36 = vsel %vm444_vm1, %v553_v16, 0.0  ;;  %v564_v13 = vmul.f32 %v1121_v27, %v1121_v27  ;;  %v512_v19 = vsel %vm444_vm1, %v1121_v27, 0.0  ;;  %v516_v27 = vsel %vm444_vm1, %v1155_v35, 0.0 }
  0xd0   : > { %475 = vst.msk [vmem:[%s1078_s7 + $0xf0] sm:$0xff] %vm444_vm1, %v1213_v17  ;;  %v493_v38 = vadd.f32 %v492_v28, %v491_v24  ;;  %v592_v40 = vadd.f32 %v591_v36, %v590_v20  ;;  %v607_v56 = vsel %vm444_vm1, %v561_v4, 0.0  ;;  %v609_v20 = vsel %vm444_vm1, %v562_v7, 0.0 }
  0xd1   : > { %v510_v24 = vsel %vm444_vm1, %v1104_v23, 0.0  ;;  %v611_v36 = vsel %vm444_vm1, %v563_v14, 0.0  ;;  %v514_v23 = vsel %vm444_vm1, %v1138_v31, 0.0  ;;  %v520_v35 = vsel %vm444_vm1, %v1203_v9, 0.0 }
  0xd2   : > { %v495_v18 = vadd.f32 %v494_v42, %v493_v38  ;;  %v594_v44 = vadd.f32 %v593_v41, %v592_v40  ;;  %v565_v38 = vmul.f32 %v1138_v31, %v1138_v31  ;;  %v613_v42 = vsel %vm444_vm1, %v564_v13, 0.0 }
  0xd3   : > { %v518_v31 = vsel %vm444_vm1, %v1179_v52, 0.0  ;;  %v573_v7 = vmul.f32 %v1147_v34, %v1147_v34  ;;  %v576_v13 = vmul.f32 %v1213_v17, %v1213_v17 }
  0xd4   : > { %v1235_v48 = vpop.f32.mrf.mxu2  ;;  %v497_v49 = vadd.f32 %v496_v46, %v495_v18  ;;  %v596_v50 = vadd.f32 %v595_v45, %v594_v44  ;;  %v615_v45 = vsel %vm444_vm1, %v565_v38, 0.0  ;;  %v567_v46 = vmul.f32 %v1179_v52, %v1179_v52 }
  0xd5   : > { %468 = vst.msk [vmem:[%s1078_s7 + $0xb8] sm:$0xff] %vm444_vm1, %v1235_v48  ;;  %v1245_v54 = vpop.f32.mrf.mxu3 }
  0xd6   : > { %v598_v25 = vadd.f32 %v597_v21, %v596_v50  ;;  %v499_v55 = vadd.f32 %v498_v51, %v497_v49  ;;  %476 = vst.msk [vmem:[%s1078_s7 + $0xf8] sm:$0xff] %vm444_vm1, %v1245_v54  ;;  %v617_v50 = vsel %vm444_vm1, %v566_v43, 0.0  ;;  %v568_v21 = vmul.f32 %v1203_v9, %v1203_v9 }
  0xd7   : > { %v571_v9 = vmul.f32 %v1113_v26, %v1113_v26 }
  0xd8   : > { %v501_v61 = vadd.f32 %v500_v58, %v499_v55  ;;  %v600_v29 = vadd.f32 %v599_v57, %v598_v25  ;;  %v619_v25 = vsel %vm444_vm1, %v567_v46, 0.0  ;;  %v569_v55 = vmul.f32 %v1235_v48, %v1235_v48 }
  0xd9   : > { %v621_v52 = vsel %vm444_vm1, %v568_v21, 0.0 }
  0xda   : > { %v503_v1 = vadd.f32 %v502_v63, %v501_v61  ;;  %v602_v2 = vadd.f32 %v601_v62, %v600_v29  ;;  %v522_v61 = vsel %vm444_vm1, %v1235_v48, 0.0  ;;  %v524_v63 = vsel %vm444_vm1, %v1096_v22, 0.0 }
  0xdb   : > { %v623_v0 = vsel %vm444_vm1, %v569_v55, 0.0  ;;  %v572_v48 = vmul.f32 %v1130_v30, %v1130_v30  ;;  %v528_v22 = vsel %vm444_vm1, %v1130_v30, 0.0  ;;  %v532_v30 = vsel %vm444_vm1, %v1164_v39, 0.0 }
  0xdc   : > { %v505_v5 = vadd.f32 %v504_v33, %v503_v1  ;;  %v604_v6 = vadd.f32 %v603_v3, %v602_v2  ;;  %v625_v3 = vsel %vm444_vm1, %v570_v59, 0.0  ;;  %v526_v33 = vsel %vm444_vm1, %v1113_v26, 0.0 }
  0xdd   : > { %v530_v26 = vsel %vm444_vm1, %v1147_v34, 0.0  ;;  %v534_v34 = vsel %vm444_vm1, %v1190_v60, 0.0 }
  0xde   : > { %v606_v10 = vadd.f32 %v605_v8, %v604_v6  ;;  %v507_v11 = vadd.f32 %v506_v37, %v505_v5  ;;  %v627_v6 = vsel %vm444_vm1, %v571_v9, 0.0 }
  0xe0   : > { %v509_v15 = vadd.f32 %v508_v12, %v507_v11  ;;  %v608_v16 = vadd.f32 %v607_v56, %v606_v10  ;;  %v629_v10 = vsel %vm444_vm1, %v572_v48, 0.0  ;;  %v574_v11 = vmul.f32 %v1164_v39, %v1164_v39 }
  0xe1   : > { %v631_v56 = vsel %vm444_vm1, %v573_v7, 0.0  ;;  %v536_v39 = vsel %vm444_vm1, %v1213_v17, 0.0 }
  0xe2   : > { %v511_v28 = vadd.f32 %v510_v24, %v509_v15  ;;  %v610_v32 = vadd.f32 %v609_v20, %v608_v16  ;;  %v575_v15 = vmul.f32 %v1190_v60, %v1190_v60  ;;  %v633_v24 = vsel %vm444_vm1, %v574_v11, 0.0 }
  0xe3   : > { %v538_v60 = vsel %vm444_vm1, %v1245_v54, 0.0 }
  0xe4   : > { %v513_v40 = vadd.f32 %v512_v19, %v511_v28  ;;  %v612_v41 = vadd.f32 %v611_v36, %v610_v32  ;;  %v635_v36 = vsel %vm444_vm1, %v575_v15, 0.0  ;;  %v577_v19 = vmul.f32 %v1245_v54, %v1245_v54 }
  0xe6   : > { %v614_v18 = vadd.f32 %v613_v42, %v612_v41  ;;  %v515_v44 = vadd.f32 %v514_v23, %v513_v40  ;;  %v637_v41 = vsel %vm444_vm1, %v576_v13, 0.0  ;;  %v639_v43 = vsel %vm444_vm1, %v577_v19, 0.0 }
  0xe8   : > { %v517_v47 = vadd.f32 %v516_v27, %v515_v44  ;;  %v616_v49 = vadd.f32 %v615_v45, %v614_v18 }
  0xea   : > { %v519_v51 = vadd.f32 %v518_v31, %v517_v47  ;;  %v618_v53 = vadd.f32 %v617_v50, %v616_v49 }
  0xec   : > { %v620_v57 = vadd.f32 %v619_v25, %v618_v53  ;;  %v521_v58 = vadd.f32 %v520_v35, %v519_v51 }
  0xee   : > { %v622_v29 = vadd.f32 %v621_v52, %v620_v57  ;;  %v523_v62 = vadd.f32 %v522_v61, %v521_v58 }
  0xf0   : > { %v525_v1 = vadd.f32 %v524_v63, %v523_v62  ;;  %v624_v2 = vadd.f32 %v623_v0, %v622_v29 }
  0xf2   : > { %v527_v4 = vadd.f32 %v526_v33, %v525_v1  ;;  %v626_v5 = vadd.f32 %v625_v3, %v624_v2 }
  0xf4   : > { %v529_v8 = vadd.f32 %v528_v22, %v527_v4  ;;  %v628_v37 = vadd.f32 %v627_v6, %v626_v5 }
  0xf6   : > { %v630_v12 = vadd.f32 %v629_v10, %v628_v37  ;;  %v531_v14 = vadd.f32 %v530_v26, %v529_v8 }
  0xf8   : > { %v533_v16 = vadd.f32 %v532_v30, %v531_v14  ;;  %v632_v20 = vadd.f32 %v631_v56, %v630_v12 }
  0xfa   : > { %v535_v28 = vadd.f32 %v534_v34, %v533_v16  ;;  %v634_v32 = vadd.f32 %v633_v24, %v632_v20 }
  0xfc   : > { %v636_v38 = vadd.f32 %v635_v36, %v634_v32  ;;  %v537_v40 = vadd.f32 %v536_v39, %v535_v28 }
  0xfe   : > { %v638_v42 = vadd.f32 %v637_v41, %v636_v38  ;;  %v539_v23 = vadd.f32 %v538_v60, %v537_v40 }
 0x100   : > { %v540_v18 = vrot.slane %v539_v23, 4  ;;  %v640_v44 = vadd.f32 %v639_v43, %v638_v42 }
 0x102   : > { %v541_v45 = vadd.f32 %v540_v18, %v539_v23  ;;  %v641_v17 = vrot.slane %v640_v44, 4 }
 0x104   : > { %v542_v27 = vrot.slane %v541_v45, 2  ;;  %v642_v46 = vadd.f32 %v641_v17, %v640_v44 }
 0x106   : > { %v543_v47 = vadd.f32 %v542_v27, %v541_v45  ;;  %v643_v49 = vrot.slane %v642_v46, 2 }
 0x108   : > { %v544_v54 = vrot.slane %v543_v47, 1  ;;  %v644_v50 = vadd.f32 %v643_v49, %v642_v46 }
 0x10a   : > { %v645_v31 = vrot.slane %v644_v50, 1  ;;  %v545_v21 = vadd.f32 %v544_v54, %v543_v47 }
 0x10c   : > { %v646_v51 = vadd.f32 %v645_v31, %v644_v50 }
 0x10e   : > { %v648_v53 = vsel %vm647_vm2, %v545_v21, %v646_v51 }
 0x10f   : > { %650 = vst.msk [vmem:[%s172_s20] sm:$0x3] %vm649_vm3, %v648_v53 }
 0x110   : > { %943 = shalt.err (!%p940_p3)
}
 0x111   : > { %877 = dma.vmem_to_hbm [thread:$0]  (%p1038_p5), %s674_s24, 32, %s676_s25, %s657_s16  }
 0x112 PF: > { %p883_p4 = scmp.ge.s32.totalorder %s978_s15, 2  ;;  %s695_s6 = sand.u32 1, %s966_s12  }
 0x113   : > { %s696_s7 = scalar_lea.sflag [#allocation3], %s695_s6 }
 0x114   : > { %p880_p7 = pnand %p883_p4, %p1042_p6 }
 0x116   : > { %p881_p8 = pneg %p880_p7 }
 0x118   : > { %961 = dma.done.wait (%p881_p8), %s696_s7, 32  }
 0x119   : > { %963 = vsyncadd (%p881_p8), %s696_s7, 4294967264  ;;  %p14_p9 = scmp.ge.s32.totalorder %s1025_s18, 4   ;;  %s1384_s12 = smov %s970_s13 }
 0x11a   : > { %s1385_s13 = smov %s974_s14  ;;  %s1386_s14 = smov %s1036_s21 }
 0x11b   : > { %s1387_s15 = smov %s1025_s18  ;;  %16 = sbr.rel (!%p14_p9) target bundleno = 3 (0x3), region = 75 }
 0x120   :  { %702 = vsyncpa [#allocation3], 1 }
 0x121   :  { %704 = vsyncpa [#allocation3 + $0x1], 1 }

</bundles_post_ra>
